<compile_context>
chip_gen: v7x
topology: tpu7x:2x2x1
jax: 0.10.0
libtpu: 0.0.40
codegen_flags: <defaults>
</compile_context>

<pallas_src>
import jax
import jax.numpy as jnp
import numpy as np
from jax import lax
from jax.experimental import pallas as pl
from jax.experimental.pallas import tpu as pltpu


def _smoothgrad_kernel(noise_ref, w_ref, base_ref, tbl_ref, sel_ref,
                       o_ref, hist_ref):
    """One grid step: R = Ts*B noise rows -> logits -> argmax histogram.

    noise_ref : [R, D]    noise rows for this step (sample-major, batch-minor)
    w_ref     : [K, D]    classifier weights (single copy)
    base_ref  : [R, K]    per-row logit offset = tile(inputs @ W^T + bias, Ts)
    tbl_ref   : [K, HWp]  max_c |W[k, c, :]|, lane-padded
    sel_ref   : [B, R]    (1/sample_size)-scaled row->batch selection matrix
    o_ref     : [B, HWp]  output slab (written once, at the last step)
    hist_ref  : [B, K]    VMEM scratch: running class histogram (pre-scaled)
    """
    s = pl.program_id(1)
    n_steps = pl.num_programs(1)

    @pl.when(s == 0)
    def _init():
        hist_ref[...] = jnp.zeros_like(hist_ref)

    # logits = noise @ W^T + base  (contract last dims; no materialized W^T).
    logits = lax.dot_general(
        noise_ref[...], w_ref[...], (((1,), (1,)), ((), ())),
        preferred_element_type=jnp.float32,
    ) + base_ref[...]                                          # [R, K]

    R, K = logits.shape
    # First-max argmax (matches torch.max / jnp.argmax tie-breaking) -> one-hot.
    iota = lax.broadcasted_iota(jnp.int32, (R, K), 1)
    mx = jnp.max(logits, axis=-1, keepdims=True)
    first = jnp.min(jnp.where(logits == mx, iota, K), axis=-1, keepdims=True)
    onehot = (iota == first).astype(jnp.float32)               # [R, K]

    # Fold this step's Ts samples into the per-batch class histogram
    # (pre-scaled by 1/sample_size via sel).  Tiny [B,R] x [R,K] matmul.
    hist_ref[...] += jnp.dot(sel_ref[...], onehot,
                             preferred_element_type=jnp.float32)

    @pl.when(s == n_steps - 1)
    def _finalize():
        # Single [B,K] x [K,HWp] matmul; one lane-dense store of the output.
        o_ref[...] = jnp.dot(hist_ref[...], tbl_ref[...],
                             preferred_element_type=jnp.float32)


def _chip_config():
    """Per-generation tiling knobs (TC count, VMEM budgets, MXU row tile)."""
    kind = ""
    try:
        kind = jax.devices()[0].device_kind.lower()
    except Exception:
        pass
    if "7" in kind:
        # v7x: 2 TensorCores per chip, only 64 MiB VMEM per TC.
        return dict(n_cores=2, row_align=256,
                    x_budget_bytes=12 * 1024 * 1024,
                    vmem_limit_bytes=48 * 1024 * 1024)
    if "v5 lite" in kind or "v5e" in kind or "v5lite" in kind:
        # v5e: 1 TC, 128 MiB VMEM, 128-wide MXU.
        return dict(n_cores=1, row_align=128,
                    x_budget_bytes=32 * 1024 * 1024,
                    vmem_limit_bytes=96 * 1024 * 1024)
    # v6e (and safe default): 1 TC, 128 MiB VMEM, 256-wide MXU.
    return dict(n_cores=1, row_align=256,
                x_budget_bytes=32 * 1024 * 1024,
                vmem_limit_bytes=96 * 1024 * 1024)


def _choose_tiling(sample_size, B, D, *, n_cores, row_align, x_budget_bytes,
                   target_rows=1024):
    """Pick (P parallel chunks, Ts samples/step, n_steps per chunk)."""
    P = n_cores if (n_cores > 1 and sample_size % n_cores == 0
                    and sample_size >= 2 * n_cores) else 1
    s_per = sample_size // P
    # Double-buffered noise tile: 2 * (Ts*B*D*4) bytes must fit the budget.
    ts_vmem = max(1, x_budget_bytes // (2 * B * D * 4))
    ts_cap = max(1, min(s_per, ts_vmem, max(1, target_rows // max(B, 1))))

    def pick(align):
        cands = [c for c in range(1, ts_cap + 1)
                 if s_per % c == 0 and (c * B) % align == 0]
        if not cands:
            return None
        if P > 1:
            # Keep >=2 steps per core so the per-core pipeline overlaps DMA.
            multi = [c for c in cands if s_per // c >= 2]
            if multi:
                return max(multi)
        return max(cands)

    Ts = pick(row_align) or pick(8)
    if Ts is None:
        # No 8-row-aligned divisor: one full-extent block is always legal.
        return 1, sample_size, 1
    return P, Ts, s_per // Ts


def _build_smoothgrad_call(B, D, K, HWp, P, Ts, n_steps, vmem_limit_bytes):
    R = Ts * B

    def const(shape):
        return pl.BlockSpec(shape, lambda p, s: (0, 0))

    grid_spec = pltpu.PrefetchScalarGridSpec(
        num_scalar_prefetch=0,
        grid=(P, n_steps),
        in_specs=[
            pl.BlockSpec((R, D), lambda p, s: (p * n_steps + s, 0)),  # noise
            const((K, D)),      # weights
            const((R, K)),      # tiled per-batch logit offsets
            const((K, HWp)),    # saliency table max_c |W|
            const((B, R)),      # (1/S)-scaled row->batch selection
        ],
        out_specs=pl.BlockSpec((None, B, HWp), lambda p, s: (p, 0, 0)),
        scratch_shapes=[pltpu.VMEM((B, K), jnp.float32)],
    )
    return pl.pallas_call(
        _smoothgrad_kernel,
        out_shape=jax.ShapeDtypeStruct((P, B, HWp), jnp.float32),
        grid_spec=grid_spec,
        compiler_params=pltpu.CompilerParams(
            dimension_semantics=("parallel", "arbitrary"),
            vmem_limit_bytes=vmem_limit_bytes,
        ),
    )


def smoothgrad_saliency(inputs, w_param, bias, noise_level, sample_size, key):
    """inputs: [B, C, H, W] f32; w_param: [K, C, H, W]; bias: [K].
    Returns (saliency [B, H, W] f32, noise [S, B, C, H, W])."""
    B, C, H, W = inputs.shape
    K = w_param.shape[0]
    D = C * H * W
    HW = H * W
    HWp = ((HW + 127) // 128) * 128   # lane-dense output stores

    # Noise generated directly in [S, B, ...] order; the noisy tensor itself is
    # never materialized in HBM (inputs are folded into the logit offsets).
    noise = noise_level * jax.random.normal(
        key, (sample_size, B, C, H, W), dtype=jnp.float32)
    noise2d = noise.reshape(sample_size * B, D)      # free contiguous reshape

    w_kd = w_param.reshape(K, D).astype(jnp.float32)   # single weight copy
    # Per-batch logit offset: base[b] = inputs[b] @ W^T + bias.
    base = jnp.dot(inputs.reshape(B, D).astype(jnp.float32), w_kd.T,
                   precision=jax.lax.Precision.HIGHEST)
    base = base + bias.astype(jnp.float32)[None, :]            # [B, K]
    # Per-class saliency table: max over channels of |W|, lane-padded.
    tbl = jnp.max(jnp.abs(w_kd).reshape(K, C, HW), axis=1)
    tbl = jnp.pad(tbl, ((0, 0), (0, HWp - HW)))

    cfg = _chip_config()
    P, Ts, n_steps = _choose_tiling(
        sample_size, B, D,
        n_cores=cfg["n_cores"], row_align=cfg["row_align"],
        x_budget_bytes=cfg["x_budget_bytes"])
    R = Ts * B
    base_tiled = jnp.tile(base, (Ts, 1))                        # [R, K]
    # Row->batch selection (row r holds batch r % B), pre-scaled by 1/S.
    sel = (jnp.arange(R)[None, :] % B == jnp.arange(B)[:, None]
           ).astype(jnp.float32) * (1.0 / sample_size)          # [B, R]

    call = _build_smoothgrad_call(B, D, K, HWp, P, Ts, n_steps,
                                  cfg["vmem_limit_bytes"])
    out = call(noise2d, w_kd, base_tiled, tbl, sel)             # [P, B, HWp]

    saliency = jnp.sum(out, axis=0)[:, :HW].reshape(B, H, W)
    return saliency, noise


def _reference(inputs, noise, w_param, bias):
    # Pure-JAX reference of the same semantics (linear-model SmoothGrad).
    S, B, C, H, W = noise.shape
    K = w_param.shape[0]
    D = C * H * W
    noisy = inputs[None] + noise
    w_kd = w_param.reshape(K, D)
    x = noisy.reshape(S, B, D)
    logits = jnp.einsum("sbd,kd->sbk", x, w_kd,
                        precision=jax.lax.Precision.HIGHEST) + bias
    idx = jnp.argmax(logits, axis=-1)                 # [S, B]
    grads = w_kd[idx]                                 # [S, B, D]
    sal = jnp.max(jnp.abs(grads).reshape(S, B, C, H * W), axis=2)
    return sal.mean(axis=0).reshape(B, H, W)


if __name__ == "__main__":
    B, C, H, W = 2, 4, 16, 16
    K = 8                 # number of classes for the linear "model"
    sample_size = 8
    noise_level = 0.1

    root = jax.random.PRNGKey(0)
    k_in, k_w, k_b, k_noise = jax.random.split(root, 4)

    inputs = jax.random.normal(k_in, (B, C, H, W), dtype=jnp.float32)
    w_param = 0.05 * jax.random.normal(k_w, (K, C, H, W), dtype=jnp.float32)
    bias = 0.01 * jax.random.normal(k_b, (K,), dtype=jnp.float32)

    saliency, noise = smoothgrad_saliency(
        inputs, w_param, bias, noise_level, sample_size, k_noise)
    saliency = jax.block_until_ready(saliency)

    ref = jax.block_until_ready(_reference(inputs, noise, w_param, bias))
    np.testing.assert_allclose(np.asarray(saliency), np.asarray(ref),
                               rtol=1e-5, atol=1e-6)

    print("KERNEL_OK")
</pallas_src>

<mosaic_0001>
module attributes {stable_mosaic.version = 11 : i64} {
  func.func @_smoothgrad_kernel(%arg0: i32, %arg1: i32, %arg2: memref<16x1024xf32, #tpu.memory_space<vmem>>, %arg3: memref<8x1024xf32, #tpu.memory_space<vmem>>, %arg4: memref<16x8xf32, #tpu.memory_space<vmem>>, %arg5: memref<8x256xf32, #tpu.memory_space<vmem>>, %arg6: memref<2x16xf32, #tpu.memory_space<vmem>>, %arg7: memref<1x2x256xf32, #tpu.memory_space<vmem>>, %arg8: memref<2x8xf32, #tpu.memory_space<vmem>>) attributes {dimension_semantics = [#tpu.dimension_semantics<parallel>, #tpu.dimension_semantics<arbitrary>], iteration_bounds = array<i64: 1, 1>, scalar_prefetch = 0 : i64, scratch_operands = 1 : i64, tpu.core_type = #tpu.core_type<tc>, window_params = [{transform_indices = @transform_0, window_bounds = array<i64: 16, 1024>}, {pipeline_mode = #tpu.pipeline_mode<synchronous>, transform_indices = @transform_1, window_bounds = array<i64: 8, 1024>}, {pipeline_mode = #tpu.pipeline_mode<synchronous>, transform_indices = @transform_2, window_bounds = array<i64: 16, 8>}, {pipeline_mode = #tpu.pipeline_mode<synchronous>, transform_indices = @transform_3, window_bounds = array<i64: 8, 256>}, {pipeline_mode = #tpu.pipeline_mode<synchronous>, transform_indices = @transform_4, window_bounds = array<i64: 2, 16>}, {transform_indices = @transform_5, window_bounds = array<i64: 1, 2, 256>}]} {
    %c0_i32 = arith.constant 0 : i32
    %0 = arith.cmpi eq, %arg1, %c0_i32 : i32
    %1 = arith.extui %0 : i1 to i32
    %c0_i32_0 = arith.constant 0 : i32
    %2 = arith.cmpi ne, %1, %c0_i32_0 : i32
    scf.if %2 {
      %cst_17 = arith.constant 0.000000e+00 : f32
      %29 = vector.broadcast %cst_17 : f32 to vector<2x8xf32>
      %c0_18 = arith.constant 0 : index
      %c0_19 = arith.constant 0 : index
      %30 = vector.load %arg8[%c0_18, %c0_19] : memref<2x8xf32, #tpu.memory_space<vmem>>, vector<2x8xf32>
      tpu.vector_store %arg8[%c0_18, %c0_19], %29 {strides = array<i32>} : memref<2x8xf32, #tpu.memory_space<vmem>>, vector<2x8xf32>,
    } else {
    }
    %c0 = arith.constant 0 : index
    %c0_1 = arith.constant 0 : index
    %3 = vector.load %arg2[%c0, %c0_1] : memref<16x1024xf32, #tpu.memory_space<vmem>>, vector<16x1024xf32>
    %c0_2 = arith.constant 0 : index
    %c0_3 = arith.constant 0 : index
    %4 = vector.load %arg3[%c0_2, %c0_3] : memref<8x1024xf32, #tpu.memory_space<vmem>>, vector<8x1024xf32>
    %cst = arith.constant dense<0.000000e+00> : vector<16x8xf32>
    %5 = tpu.matmul %3, %4, %cst {dimension_numbers = #tpu.dot_dimension_numbers<[1], [1], [0], [0], [0, 0, 1, 0], [], []>} : vector<16x1024xf32>, vector<8x1024xf32>, vector<16x8xf32> -> vector<16x8xf32>
    %c0_4 = arith.constant 0 : index
    %c0_5 = arith.constant 0 : index
    %6 = vector.load %arg4[%c0_4, %c0_5] : memref<16x8xf32, #tpu.memory_space<vmem>>, vector<16x8xf32>
    %7 = arith.addf %5, %6 : vector<16x8xf32>
    %8 = tpu.iota {dimensions = array<i32: 1>} : vector<16x8xi32>
    %cst_6 = arith.constant dense<0xFF800000> : vector<16xf32>
    %9 = vector.multi_reduction <maximumf>, %7, %cst_6 [1] : vector<16x8xf32> to vector<16xf32>
    %10 = vector.shape_cast %9 : vector<16xf32> to vector<16x1xf32>
    %11 = vector.broadcast %10 : vector<16x1xf32> to vector<16x8xf32>
    %12 = arith.cmpf oeq, %7, %11 : vector<16x8xf32>
    %c8_i32 = arith.constant 8 : i32
    %13 = vector.broadcast %c8_i32 : i32 to vector<16x8xi32>
    %14 = arith.select %12, %8, %13 : vector<16x8xi1>, vector<16x8xi32>
    %cst_7 = arith.constant dense<2147483647> : vector<16xi32>
    %15 = vector.multi_reduction <minsi>, %14, %cst_7 [1] : vector<16x8xi32> to vector<16xi32>
    %16 = vector.shape_cast %15 : vector<16xi32> to vector<16x1xi32>
    %17 = vector.broadcast %16 : vector<16x1xi32> to vector<16x8xi32>
    %18 = arith.cmpi eq, %8, %17 : vector<16x8xi32>
    %19 = arith.extui %18 : vector<16x8xi1> to vector<16x8xi32>
    %20 = arith.sitofp %19 : vector<16x8xi32> to vector<16x8xf32>
    %c0_8 = arith.constant 0 : index
    %c0_9 = arith.constant 0 : index
    %21 = vector.load %arg8[%c0_8, %c0_9] : memref<2x8xf32, #tpu.memory_space<vmem>>, vector<2x8xf32>
    %c0_10 = arith.constant 0 : index
    %c0_11 = arith.constant 0 : index
    %22 = vector.load %arg6[%c0_10, %c0_11] : memref<2x16xf32, #tpu.memory_space<vmem>>, vector<2x16xf32>
    %cst_12 = arith.constant dense<0.000000e+00> : vector<2x8xf32>
    %23 = tpu.matmul %22, %20, %cst_12 {dimension_numbers = #tpu.dot_dimension_numbers<[1], [0], [0], [1], [0, 0, 1, 1], [], []>} : vector<2x16xf32>, vector<16x8xf32>, vector<2x8xf32> -> vector<2x8xf32>
    %24 = arith.addf %21, %23 : vector<2x8xf32>
    %c0_13 = arith.constant 0 : index
    %c0_14 = arith.constant 0 : index
    %25 = vector.load %arg8[%c0_13, %c0_14] : memref<2x8xf32, #tpu.memory_space<vmem>>, vector<2x8xf32>
    tpu.vector_store %arg8[%c0_13, %c0_14], %24 {strides = array<i32>} : memref<2x8xf32, #tpu.memory_space<vmem>>, vector<2x8xf32>,
    %c0_i32_15 = arith.constant 0 : i32
    %26 = arith.cmpi eq, %arg1, %c0_i32_15 : i32
    %27 = arith.extui %26 : i1 to i32
    %c0_i32_16 = arith.constant 0 : i32
    %28 = arith.cmpi ne, %27, %c0_i32_16 : i32
    scf.if %28 {
      %c0_17 = arith.constant 0 : index
      %c0_18 = arith.constant 0 : index
      %29 = vector.load %arg8[%c0_17, %c0_18] : memref<2x8xf32, #tpu.memory_space<vmem>>, vector<2x8xf32>
      %c0_19 = arith.constant 0 : index
      %c0_20 = arith.constant 0 : index
      %30 = vector.load %arg5[%c0_19, %c0_20] : memref<8x256xf32, #tpu.memory_space<vmem>>, vector<8x256xf32>
      %cst_21 = arith.constant dense<0.000000e+00> : vector<2x256xf32>
      %31 = tpu.matmul %29, %30, %cst_21 {dimension_numbers = #tpu.dot_dimension_numbers<[1], [0], [0], [1], [0, 0, 1, 1], [], []>} : vector<2x8xf32>, vector<8x256xf32>, vector<2x256xf32> -> vector<2x256xf32>
      %c0_22 = arith.constant 0 : index
      %c0_23 = arith.constant 0 : index
      %c0_24 = arith.constant 0 : index
      %32 = vector.load %arg7[%c0_22, %c0_23, %c0_24] : memref<1x2x256xf32, #tpu.memory_space<vmem>>, vector<1x2x256xf32>
      %33 = vector.shape_cast %32 : vector<1x2x256xf32> to vector<2x256xf32>
      %34 = vector.shape_cast %31 : vector<2x256xf32> to vector<1x2x256xf32>
      tpu.vector_store %arg7[%c0_22, %c0_23, %c0_24], %34 {strides = array<i32>} : memref<1x2x256xf32, #tpu.memory_space<vmem>>, vector<1x2x256xf32>,
    } else {
    }
    return
  }
  func.func @transform_0(%arg0: i32, %arg1: i32) -> (i32, i32) {
    %c1_i32 = arith.constant 1 : i32
    %0 = arith.muli %arg0, %c1_i32 : i32
    %1 = arith.addi %0, %arg1 : i32
    %c0_i32 = arith.constant 0 : i32
    %c0_i32_0 = arith.constant 0 : i32
    return %1, %c0_i32 : i32, i32
  }
  func.func @transform_1(%arg0: i32, %arg1: i32) -> (i32, i32) {
    %c0_i32 = arith.constant 0 : i32
    %c0_i32_0 = arith.constant 0 : i32
    %c0_i32_1 = arith.constant 0 : i32
    return %c0_i32, %c0_i32_0 : i32, i32
  }
  func.func @transform_2(%arg0: i32, %arg1: i32) -> (i32, i32) {
    %c0_i32 = arith.constant 0 : i32
    %c0_i32_0 = arith.constant 0 : i32
    %c0_i32_1 = arith.constant 0 : i32
    return %c0_i32, %c0_i32_0 : i32, i32
  }
  func.func @transform_3(%arg0: i32, %arg1: i32) -> (i32, i32) {
    %c0_i32 = arith.constant 0 : i32
    %c0_i32_0 = arith.constant 0 : i32
    %c0_i32_1 = arith.constant 0 : i32
    return %c0_i32, %c0_i32_0 : i32, i32
  }
  func.func @transform_4(%arg0: i32, %arg1: i32) -> (i32, i32) {
    %c0_i32 = arith.constant 0 : i32
    %c0_i32_0 = arith.constant 0 : i32
    %c0_i32_1 = arith.constant 0 : i32
    return %c0_i32, %c0_i32_0 : i32, i32
  }
  func.func @transform_5(%arg0: i32, %arg1: i32) -> (i32, i32, i32) {
    %c0_i32 = arith.constant 0 : i32
    %c0_i32_0 = arith.constant 0 : i32
    %c0_i32_1 = arith.constant 0 : i32
    return %arg0, %c0_i32, %c0_i32_0 : i32, i32, i32
  }
}

</mosaic_0001>

<bundles_post_ra>
// kernel: tpu_custom_call.1
= control target key start
LH: loop header
LB: loop body
LE: loop exit
PB: predicated region body
PF: predicated region fallthrough
CT: control target
= control target key end

     0   :  { %10 = vsyncpa [#allocation4], 0  ;;  %s970_s0 = inlined_call_operand.hbm [shape: f32[16,1024], index: 0, kind: input, shape index: {}]   ;;  %s971_s1 = inlined_call_operand.hbm [shape: f32[8,1024], index: 1, kind: input, shape index: {}]   ;;  %s972_s2 = inlined_call_operand.hbm [shape: f32[16,8], index: 2, kind: input, shape index: {}]   ;;  %s973_s3 = inlined_call_operand.hbm [shape: f32[8,256], index: 3, kind: input, shape index: {}]   ;;  %s974_s4 = inlined_call_operand.hbm [shape: f32[2,16], index: 4, kind: input, shape index: {}]   ;;  %s975_s5 = inlined_call_operand.hbm [shape: f32[1,2,256], index: 5, kind: output, shape index: {}]  }
   0x1   :  { %11 = vsyncpa [#allocation7], 0 }
   0x2   :  { %12 = vsyncpa [#allocation10], 0 }
   0x3   :  { %13 = vsyncpa [#allocation5], 0  ;;  %s847_s18 = smov [#allocation6]   ;;  %s848_s20 = smov [#allocation9]  }
   0x4   :  { %s37_s19 = sshll.u32 %s847_s18, 4  ;;  %s59_s21 = sshll.u32 %s848_s20, 4  ;;  %s38_s19 = int_to_ptr.vmem [resolvable:$true] %s37_s19  ;;  %s60_s21 = int_to_ptr.vmem [resolvable:$true] %s59_s21 }
   0x5   :  { %s707_s24 = scalar_lea.hbm %s971_s1, 1024 }
   0x6   :  { %p708_p0 = scmp.ne.s32.totalorder %s971_s1, %s707_s24  ;;  %p711_p1 = scmp.lt.u32.totalorder %s707_s24, %s971_s1 }
   0x8   :  { %p713_p2 = pnand %p711_p1, %p708_p0 }
   0xa   :  { %716 = shalt.err (!%p713_p2)
}
   0xb   :  { %s717_s29 = scalar_lea.vmem %s38_s19, 1024  ;;  %p722_p4 = scmp.lt.s32.totalorder %s38_s19, %s38_s19 }
   0xc   :  { %p718_p3 = scmp.ne.s32.totalorder %s38_s19, %s717_s29  ;;  %p723_p5 = scmp.lt.s32.totalorder %s717_s29, %s717_s29 }
   0xe   :  { %p724_p6 = por %p723_p5, %p722_p4 }
  0x10   :  { %p725_p7 = pnand %p724_p6, %p718_p3 }
  0x12   :  { %728 = shalt.err (!%p725_p7)
}
  0x13   :  { %40 = dma.hbm_to_vmem [thread:$0]  %s971_s1, 1024, %s38_s19, [#allocation7]  }
  0x14   :  { %s729_s9 = scalar_lea.hbm %s973_s3, 256 }
  0x15   :  { %p730_p8 = scmp.ne.s32.totalorder %s973_s3, %s729_s9  ;;  %p733_p9 = scmp.lt.u32.totalorder %s729_s9, %s973_s3 }
  0x17   :  { %p735_p10 = pnand %p733_p9, %p730_p8 }
  0x19   :  { %738 = shalt.err (!%p735_p10)
}
  0x1a   :  { %s739_s14 = scalar_lea.vmem %s60_s21, 256  ;;  %p744_p12 = scmp.lt.s32.totalorder %s60_s21, %s60_s21 }
  0x1b   :  { %p740_p11 = scmp.ne.s32.totalorder %s60_s21, %s739_s14  ;;  %p745_p13 = scmp.lt.s32.totalorder %s739_s14, %s739_s14 }
  0x1d   :  { %p746_p0 = por %p745_p13, %p744_p12 }
  0x1f   :  { %p747_p1 = pnand %p746_p0, %p740_p11 }
  0x21   :  { %750 = shalt.err (!%p747_p1)
}
  0x22   :  { %62 = dma.hbm_to_vmem [thread:$0]  %s973_s3, 256, %s60_s21, [#allocation10]  }
  0x23   :  { %s849_s16 = smov [#allocation3]   ;;  %s751_s20 = scalar_lea.hbm %s970_s0, 2048 }
  0x24   :  { %s24_s17 = sshll.u32 %s849_s16, 4  ;;  %p752_p2 = scmp.ne.s32.totalorder %s970_s0, %s751_s20  ;;  %s25_s17 = int_to_ptr.vmem [resolvable:$true] %s24_s17 }
  0x25   :  { %p755_p3 = scmp.lt.u32.totalorder %s751_s20, %s970_s0 }
  0x27   :  { %p757_p4 = pnand %p755_p3, %p752_p2 }
  0x29   :  { %760 = shalt.err (!%p757_p4)
}
  0x2a   :  { %s761_s26 = scalar_lea.vmem %s25_s17, 2048  ;;  %p766_p6 = scmp.lt.s32.totalorder %s25_s17, %s25_s17 }
  0x2b   :  { %p762_p5 = scmp.ne.s32.totalorder %s25_s17, %s761_s26  ;;  %p767_p7 = scmp.lt.s32.totalorder %s761_s26, %s761_s26 }
  0x2d   :  { %p768_p8 = por %p767_p7, %p766_p6 }
  0x2f   :  { %p769_p9 = pnand %p768_p8, %p762_p5 }
  0x31   :  { %772 = shalt.err (!%p769_p9)
}
  0x32   :  { %s850_s3 = smov 1024   ;;  %s851_s21 = smov 64  }
  0x33   :  { %30 = dma.hbm_to_vmem [thread:$0]  %s970_s0, 2048, %s25_s17, [#allocation4], %s850_s3, %s850_s3, %s851_s21  }
  0x34   :  { %s852_s29 = smov [#allocation8]   ;;  %s773_s8 = scalar_lea.hbm %s972_s2, 256 }
  0x35   :  { %s46_s30 = sshll.u32 %s852_s29, 4  ;;  %p774_p10 = scmp.ne.s32.totalorder %s972_s2, %s773_s8  ;;  %s47_s30 = int_to_ptr.vmem [resolvable:$true] %s46_s30 }
  0x36   :  { %p777_p11 = scmp.lt.u32.totalorder %s773_s8, %s972_s2 }
  0x38   :  { %p779_p12 = pnand %p777_p11, %p774_p10 }
  0x3a   :  { %782 = shalt.err (!%p779_p12)
}
  0x3b   :  { %s783_s13 = scalar_lea.vmem %s47_s30, 256  ;;  %p788_p0 = scmp.lt.s32.totalorder %s47_s30, %s47_s30 }
  0x3c   :  { %p784_p13 = scmp.ne.s32.totalorder %s47_s30, %s783_s13  ;;  %p789_p1 = scmp.lt.s32.totalorder %s783_s13, %s783_s13 }
  0x3e   :  { %p790_p2 = por %p789_p1, %p788_p0 }
  0x40   :  { %p791_p3 = pnand %p790_p2, %p784_p13 }
  0x42   :  { %794 = shalt.err (!%p791_p3)
}
  0x43   :  { %s853_s0 = smov 128   ;;  %s854_s14 = smov 8  }
  0x44   :  { %52 = dma.hbm_to_vmem [thread:$0]  %s972_s2, 256, %s47_s30, [#allocation7], %s853_s0, %s853_s0, %s854_s14  }
  0x45   :  { %s855_s16 = smov [#allocation11]   ;;  %s795_s20 = scalar_lea.hbm %s974_s4, 32 }
  0x46   :  { %s69_s17 = sshll.u32 %s855_s16, 4  ;;  %p796_p4 = scmp.ne.s32.totalorder %s974_s4, %s795_s20  ;;  %s70_s17 = int_to_ptr.vmem [resolvable:$true] %s69_s17 }
  0x47   :  { %p799_p5 = scmp.lt.u32.totalorder %s795_s20, %s974_s4 }
  0x49   :  { %p801_p6 = pnand %p799_p5, %p796_p4 }
  0x4b   :  { %804 = shalt.err (!%p801_p6)
}
  0x4c   :  { %s805_s26 = scalar_lea.vmem %s70_s17, 32  ;;  %p810_p8 = scmp.lt.s32.totalorder %s70_s17, %s70_s17 }
  0x4d   :  { %p806_p7 = scmp.ne.s32.totalorder %s70_s17, %s805_s26  ;;  %p811_p9 = scmp.lt.s32.totalorder %s805_s26, %s805_s26 }
  0x4f   :  { %p812_p10 = por %p811_p9, %p810_p8 }
  0x51   :  { %p813_p11 = pnand %p812_p10, %p806_p7 }
  0x53   :  { %816 = shalt.err (!%p813_p11)
}
  0x54   :  { %72 = dma.hbm_to_vmem [thread:$0]  %s974_s4, 32, %s70_s17, [#allocation10]  }
  0x55   :  { %839 = dma.done.wait [#allocation4], 2048  }
  0x56   :  { %840 = vsyncadd [#allocation4], 4294965248 }
  0x57   :  { %841 = dma.done.wait [#allocation7], 1280  }
  0x58   :  { %842 = vsyncadd [#allocation7], 4294966016 }
  0x59   :  { %843 = dma.done.wait [#allocation10], 288  }
  0x5a   :  { %844 = vsyncadd [#allocation10], 4294967008  ;;  %v113_v0 = vld [vmem:[#allocation6 + $0x8] sm:$0xff]  ;;  %v115_v1 = vld [vmem:[#allocation6 + $0x18] sm:$0xff]  ;;  %vm424_vm0 = vcmask 64512   ;;  %v422_v40 = vlaneseq  ;;  %v856_v60 = vmov 0.0|0.0  }
  0x5b   :  { %v112_v2 = vld [vmem:[#allocation6] sm:$0xff]  ;;  %122 = vmatprep.subr.mxu1 %v113_v0  ;;  %197 = vmatprep.subr.mxu0 %v115_v1  ;;  %v114_v3 = vld [vmem:[#allocation6 + $0x10] sm:$0xff]  ;;  %v97_v4 = vld [vmem:[#allocation3 + $0x8] sm:$0xff]  ;;  %vm94_vm5 = vcmask 58368   ;;  %v857_v61 = vmov 0.0   ;;  %vm858_vm6 = vmmov 0  }
  0x5c   :  { %v99_v5 = vld [vmem:[#allocation3 + $0x18] sm:$0xff]  ;;  %123 = vmatpush1.xpose.msra.mxu1 %v112_v2  ;;  %198 = vmatpush1.xpose.msra.mxu0 %v114_v3  ;;  %v96_v6 = vld [vmem:[#allocation3] sm:$0xff]  ;;  %v98_v7 = vld [vmem:[#allocation3 + $0x10] sm:$0xff]  ;;  %v423_v41 = vand.u32 127, %v422_v40  ;;  %95 = vst.msk [vmem:[#allocation2] sm:$0x3] %vm94_vm5, %v857_v61 }
  0x5d   :  { %v117_v8 = vld [vmem:[#allocation6 + $0x28] sm:$0xff]  ;;  %186 = vmatprep.mubr.f32.mxu1 %v97_v4  ;;  %261 = vmatprep.mubr.f32.mxu0 %v99_v5  ;;  %v116_v9 = vld [vmem:[#allocation6 + $0x20] sm:$0xff]  ;;  %v119_v12 = vld [vmem:[#allocation6 + $0x38] sm:$0xff]  ;;  %vm473_vm10 = vcmask 130048   ;;  %s860_s4 = smov [#allocation12]  }
  0x5e   :  { %v105_v10 = vld [vmem:[#allocation3 + $0x48] sm:$0xff]  ;;  %272 = vmatprep.subr.mxu0 %v117_v8  ;;  %679 = vmatprep.subr.mxu1 %v115_v1  ;;  %v104_v13 = vld [vmem:[#allocation3 + $0x40] sm:$0xff]  ;;  %v107_v14 = vld [vmem:[#allocation3 + $0x58] sm:$0xff]  ;;  %v859_v8 = vmov 1.0|1.0   ;;  %s648_s21 = sshll.u32 %s860_s4, 4  ;;  %s649_s21 = int_to_ptr.vmem [resolvable:$true] %s648_s21 }
  0x5f   :  { %v101_v11 = vld [vmem:[#allocation3 + $0x28] sm:$0xff]  ;;  %187 = vmatmul.mubr.f32.vlgmr.msra.gmra.mrb[0].mxu1 %v96_v6  ;;  %262 = vmatmul.mubr.f32.vlgmr.msra.gmra.mrb[0].mxu0 %v98_v7  ;;  %v100_v15 = vld [vmem:[#allocation3 + $0x20] sm:$0xff]  ;;  %v118_v16 = vld [vmem:[#allocation6 + $0x30] sm:$0xff]  ;;  %s817_s27 = scalar_lea.vmem %s649_s21, 64  ;;  %p822_p13 = scmp.lt.s32.totalorder %s649_s21, %s649_s21 }
  0x60   :  { %273 = vmatpush1.xpose.msra.mxu0 %v116_v9  ;;  %191 = vmatprep.mubr.f32.mxu1 %v105_v10  ;;  %v109_v17 = vld [vmem:[#allocation3 + $0x68] sm:$0xff]  ;;  %v106_v18 = vld [vmem:[#allocation3 + $0x50] sm:$0xff]  ;;  %v108_v19 = vld [vmem:[#allocation3 + $0x60] sm:$0xff]  ;;  %p818_p12 = scmp.ne.s32.totalorder %s649_s21, %s817_s27  ;;  %p823_p0 = scmp.lt.s32.totalorder %s817_s27, %s817_s27 }
  0x61   :  { %680 = vmatpush1.xpose.msra.mxu1 %v114_v3  ;;  %336 = vmatprep.mubr.f32.mxu0 %v101_v11  ;;  %v103_v20 = vld [vmem:[#allocation3 + $0x38] sm:$0xff]  ;;  %v102_v21 = vld [vmem:[#allocation3 + $0x30] sm:$0xff]  ;;  %v120_v26 = vld [vmem:[#allocation8] sm:$0xff] }
  0x62   :  { %347 = vmatprep.subr.mxu0 %v119_v12  ;;  %v111_v22 = vld [vmem:[#allocation3 + $0x78] sm:$0xff]  ;;  %v110_v23 = vld [vmem:[#allocation3 + $0x70] sm:$0xff]  ;;  %v121_v30 = vld [vmem:[#allocation8 + $0x8] sm:$0xff]  ;;  %676 = vmatprep.subr.bf16.mxu1 %v856_v60  ;;  %p824_p1 = por %p823_p0, %p822_p13 }
  0x63   :  { %192 = vmatmul.mubr.f32.gmra.mrb[2].mxu1 %v104_v13  ;;  %v472_v9 = vld [vmem:[#allocation11] sm:$0x3]  ;;  %v555_v10 = vld [vmem:[#allocation9 + $0x8] sm:$0xff]  ;;  %v554_v11 = vld [vmem:[#allocation9] sm:$0xff] }
  0x64   :  { %266 = vmatprep.mubr.f32.mxu1 %v107_v14  ;;  %v471_v12 = vld [vmem:[#allocation2] sm:$0x3]  ;;  %p825_p2 = pnand %p824_p1, %p818_p12 }
  0x67   :  { %337 = vmatmul.mubr.f32.vlgmr.msra.gmra.mrb[0].mxu0 %v100_v15 }
  0x68   :  { %348 = vmatpush1.xpose.msra.mxu0 %v118_v16  ;;  %341 = vmatprep.mubr.f32.mxu0 %v109_v17 }
  0x6b   :  { %267 = vmatmul.mubr.f32.vlgmr.msra.gmra.mrb[2].mxu1 %v106_v18  ;;  %342 = vmatmul.mubr.f32.gmra.mrb[2].mxu0 %v108_v19 }
  0x6c   :  { %411 = vmatprep.mubr.f32.mxu0 %v103_v20  ;;  %673 = vmatprep.mubr.msk.f32.mxu1 %vm858_vm6, %v857_v61 }
  0x6f   :  { %412 = vmatmul.mubr.f32.vlgmr.msra.gmra.mrb[0].mxu0 %v102_v21 }
  0x70   :  { %416 = vmatprep.mubr.f32.mxu0 %v111_v22 }
  0x73   :  { %417 = vmatmul.mubr.f32.gmra.mrb[2].mxu0 %v110_v23 }
 0x132   :  { %v188_v24 = vpop.f32.mrb[0].mxu1 }
 0x133   :  { %v190_v25 = vpop.f32.mrb[1].mxu1  ;;  %v189_v29 = vadd.f32 %v188_v24, %v120_v26 }
 0x13e   :  { %v268_v27 = vpop.f32.mrb[2].mxu1 }
 0x13f   :  { %v270_v28 = vpop.f32.mrb[3].mxu1  ;;  %v683_v34 = vadd.f32 %v268_v27, %v121_v30 }
 0x142   :  { %v413_v31 = vpop.f32.mrb[0].mxu0 }
 0x143   :  { %v682_v32 = vadd.f32 %v413_v31, %v189_v29  ;;  %v415_v33 = vpop.f32.mrb[1].mxu0 }
 0x145   :  { %v425_v35 = vsel %vm424_vm0, %v682_v32, -inf }
 0x146   :  { %v418_v36 = vpop.f32.mrb[2].mxu0  ;;  %426 = vmax.xlane.f32.xlu0 %v425_v35 }
 0x147   :  { %v684_v37 = vadd.f32 %v683_v34, %v418_v36  ;;  %v420_v38 = vpop.f32.mrb[3].mxu0 }
 0x149   :  { %v428_v39 = vsel %vm424_vm0, %v684_v37, -inf }
 0x14a   :  { %429 = vmax.xlane.f32.xlu0 %v428_v39 }
 0x1d3   :  { %v427_v42 = vpop.xlane.xlu0 %426 }
 0x1d4   :  { %vm431_vm1 = vcmp.eq.f32.partialorder %v682_v32, %v427_v42 }
 0x1d5   :  { %v433_v43 = vsel %vm431_vm1, %v423_v41, 8 }
 0x1d6   :  { %v435_v44 = vsel %vm424_vm0, %v433_v43, 2147483647 }
 0x1d7   :  { %v430_v45 = vpop.xlane.xlu0 %429  ;;  %v437_v46 = vshra.s32 %v435_v44, 16  ;;  %v436_v52 = vand.u32 65535, %v435_v44 }
 0x1d8   :  { %vm432_vm2 = vcmp.eq.f32.partialorder %v684_v37, %v430_v45 }
 0x1d9   :  { %v434_v47 = vsel %vm432_vm2, %v423_v41, 8  ;;  %v439_v48 = vcvt.s32.f32 %v437_v46  ;;  %v438_v54 = vcvt.s32.f32 %v436_v52 }
 0x1da   :  { %v450_v49 = vsel %vm424_vm0, %v434_v47, 2147483647 }
 0x1db   :  { %440 = vmin.xlane.f32.xlu1 %v439_v48  ;;  %v452_v50 = vshra.s32 %v450_v49, 16  ;;  %v451_v55 = vand.u32 65535, %v450_v49 }
 0x1dd   :  { %v454_v51 = vcvt.s32.f32 %v452_v50  ;;  %v453_v58 = vcvt.s32.f32 %v451_v55 }
 0x1df   :  { %455 = vmin.xlane.f32.xlu1 %v454_v51 }
 0x268   :  { %v441_v53 = vpop.xlane.xlu1 %440 }
 0x269   :  { %vm442_vm3 = vcmp.eq.f32.partialorder %v439_v48, %v441_v53  ;;  %v447_v62 = vcvt.f32.s32 %v441_v53 }
 0x26a   :  { %v443_v56 = vsel %vm442_vm3, %v438_v54, inf }
 0x26b   :  { %444 = vmin.xlane.f32.xlu0 %v443_v56  ;;  %v448_v2 = vshll.u32 %v447_v62, 16 }
 0x26c   :  { %v456_v57 = vpop.xlane.xlu1 %455 }
 0x26d   :  { %vm457_vm4 = vcmp.eq.f32.partialorder %v454_v51, %v456_v57  ;;  %v462_v0 = vcvt.f32.s32 %v456_v57 }
 0x26e   :  { %v458_v59 = vsel %vm457_vm4, %v453_v58, inf }
 0x26f   :  { %459 = vmin.xlane.f32.xlu1 %v458_v59  ;;  %v463_v4 = vshll.u32 %v462_v0, 16 }
 0x2f8   :  { %v445_v63 = vpop.xlane.xlu0 %444 }
 0x2f9   :  { %v446_v1 = vcvt.f32.s32 %v445_v63 }
 0x2fb   :  { %v449_v5 = vadd.s32 %v448_v2, %v446_v1 }
 0x2fc   :  { %v460_v3 = vpop.xlane.xlu1 %459 }
 0x2fd   :  { %v461_v6 = vcvt.f32.s32 %v460_v3  ;;  %vm465_vm7 = vcmp.eq.s32.totalorder %v423_v41, %v449_v5 }
 0x2ff   :  { %v464_v7 = vadd.s32 %v463_v4, %v461_v6 }
 0x301   :  { %vm466_vm8 = vcmp.eq.s32.totalorder %v423_v41, %v464_v7 }
 0x302   :  { %vm677_vm9 = vmpackc.low %vm466_vm8, %vm465_vm7 }
 0x303   :  { %678 = vmatpush3.bf16.msk.msra.mxu1 %vm677_vm9, %v859_v8 }
 0x304   :  { %559 = vmatprep.subr.mxu1 %v555_v10 }
 0x306   :  { %674 = vmatmul.mubr.msk.f32.vlgmr.msra.gmra.mrb[4].mxu1 %vm473_vm10, %v472_v9 }
 0x307   :  { %623 = vmatprep.mubr.f32.mxu1 %v857_v61  ;;  %560 = vmatpush1.msra.mxu1 %v554_v11 }
 0x3d9   :  { %v543_v13 = vpop.f32.mrb[4].mxu1 }
 0x3da   :  { %v547_v14 = vadd.f32 %v543_v13, %v471_v12  ;;  %v675_v15 = vpop.f32.mrb[5].mxu1 }
 0x3dc   :  { %549 = vst.msk [vmem:[#allocation2] sm:$0x3] %vm94_vm5, %v547_v14 }
 0x3e3   :  { %v553_v16 = vld [vmem:[#allocation2] sm:$0x3] }
 0x3e4   :  { %664 = vmatmul.mubr.msk.f32.vlgmr.msra.gmra.mrb[6].mxu1 %vm424_vm0, %v553_v16 }
 0x4b7   :  { %v625_v17 = vpop.f32.mrb[6].mxu1 }
 0x4b8   :  { %v627_v18 = vpop.f32.mrb[7].mxu1 }
 0x4b9   :  { %v632_v19 = vcombine.low %v625_v17, %v627_v18 }
 0x4bb   :  { %665 = vst.sshfl [vmem:[#allocation12] sm:$0x33 pattern:$0x76325410] %v632_v19 }
 0x4bc   :  { %828 = shalt.err (!%p825_p2)
}
 0x4bd   :  { %s829_s30 = scalar_lea.hbm %s975_s5, 64 }
 0x4be   :  { %p830_p3 = scmp.ne.s32.totalorder %s975_s5, %s829_s30  ;;  %p833_p4 = scmp.lt.u32.totalorder %s829_s30, %s975_s5 }
 0x4c0   :  { %p835_p5 = pnand %p833_p4, %p830_p3 }
 0x4c2   :  { %838 = shalt.err (!%p835_p5)
}
 0x4c3   :  { %651 = dma.vmem_to_hbm [thread:$0]  %s649_s21, 64, %s975_s5, [#allocation5]  }
 0x4c4   :  { %845 = dma.done.wait [#allocation5], 64  }
 0x4c5   :  { %846 = vsyncadd [#allocation5], 4294967232 }
 0x4c6   :  { %655 = vsyncpa [#allocation4], 1 }
 0x4c7   :  { %656 = vsyncpa [#allocation7], 1 }
 0x4c8   :  { %657 = vsyncpa [#allocation10], 1 }
 0x4c9   :  { %658 = vsyncpa [#allocation5], 1 }

</bundles_post_ra>
